<compile_context>
chip_gen: v5e
topology: v5e:2x2
jax: 0.10.0
libtpu: 0.0.40
codegen_flags: <defaults>
</compile_context>

<pallas_src>
import functools

import jax
import jax.numpy as jnp
from jax.experimental import pallas as pl
from jax.experimental.pallas import tpu as pltpu


_LANES = 128
_NEG_BIG = -1e30  # sigmoid(_NEG_BIG) == 0 exactly in f32 -> padded columns are inert


def _round_up(x, m):
    return (x + m - 1) // m * m


def _pick_bc_tile(bc, sublane_multiple):
    """BC (row) tile: a multiple of the sublane packing unit, >= 2 blocks when
    possible (lets the grid's row axis be sharded across cores), capped at 128
    to bound the per-buffer VMEM footprint."""
    if bc % sublane_multiple != 0 or bc < 2 * sublane_multiple:
        return bc  # single full-height block (full array dim is always legal)
    cap = max(sublane_multiple, min(128, bc // 2))
    best = sublane_multiple
    cand = sublane_multiple
    while cand <= cap:
        if bc % cand == 0:
            best = cand
        cand += sublane_multiple
    return best


def _pick_chunks(s, bc_tile, itemsize, target_tile_bytes, max_chunks):
    """Number of 128-lane chunks per spatial tile.

    Prefers a chunk count that divides the 128-aligned spatial extent (so the
    only padding is up to the next multiple of 128); otherwise takes the full
    byte budget and accepts tail padding -- bigger tiles amortize the
    ~0.35us per-grid-step overhead better."""
    n = max(1, _round_up(s, _LANES) // _LANES)
    budget = max(1, (target_tile_bytes // max(1, bc_tile * itemsize)) // _LANES)
    budget = max(1, min(budget, max_chunks, n))
    best_div = 1
    for cand in range(budget, 0, -1):
        if n % cand == 0:
            best_div = cand
            break
    return best_div if best_div * 2 >= budget else budget


def _dice_reduce_kernel(x_ref, t_ref, inter_ref, denom_ref, *, n_chunks):
    """Accumulate lane-wide partial sums of sigmoid(x)*t and sigmoid(x)+t.

    x_ref, t_ref:          (bc_tile, ts)   tile of logits / targets
    inter_ref, denom_ref:  (bc_tile, 128)  lane-wide f32 partial-sum outputs,
                           resident across the spatial (reduction) grid axis.
    """
    k = pl.program_id(1)  # spatial reduction axis (innermost, "arbitrary")

    @pl.when(k == 0)
    def _():
        inter_ref[...] = jnp.zeros_like(inter_ref)
        denom_ref[...] = jnp.zeros_like(denom_ref)

    acc_i = inter_ref[...]
    acc_d = denom_ref[...]
    # Static, 128-lane-aligned chunk loop: sigmoid rides the EUP, mul/add and
    # accumulation ride the VPU into the lane-dense accumulator.  No per-tile
    # cross-lane (XLU) reduction; the final reduce happens in the epilogue.
    for j in range(n_chunks):
        x = x_ref[:, j * _LANES:(j + 1) * _LANES].astype(jnp.float32)
        t = t_ref[:, j * _LANES:(j + 1) * _LANES].astype(jnp.float32)
        p = jax.nn.sigmoid(x)  # logit=True, task in {'binary', 'multilabel'}
        acc_i = acc_i + p * t
        acc_d = acc_d + (p + t)
    inter_ref[...] = acc_i
    denom_ref[...] = acc_d


@functools.partial(
    jax.jit, static_argnames=("smooth", "target_tile_bytes", "max_chunks"))
def dice_loss(inputs, targets, class_weight=None, *, smooth=1.0,
              target_tile_bytes=2 * 1024 * 1024, max_chunks=128):
    """Equivalent of DiceLoss(logit=True, task='binary'/'multilabel', smooth)."""
    b, c = inputs.shape[0], inputs.shape[1]
    bc = b * c
    s = 1
    for d in inputs.shape[2:]:
        s *= d

    # Glue: flatten to (B*C, S) so the reduction axis is the lane axis.  Keep
    # the caller's dtype (bf16 logits stay bf16); accumulate in f32 in-kernel.
    x2 = inputs.reshape(bc, s)
    t2 = targets.reshape(bc, s)

    min_itemsize = min(x2.dtype.itemsize, t2.dtype.itemsize)
    max_itemsize = max(x2.dtype.itemsize, t2.dtype.itemsize)
    sublane_multiple = 8 * max(1, 4 // min_itemsize)  # 8 f32 / 16 bf16 / 32 i8

    bc_tile = _pick_bc_tile(bc, sublane_multiple)
    n_chunks = _pick_chunks(s, bc_tile, max_itemsize, target_tile_bytes,
                            max_chunks)
    ts = n_chunks * _LANES

    # Pad the spatial axis to a multiple of ts.  Zero-padding logits is NOT
    # safe (sigmoid(0)=0.5 pollutes the denominator), so logits are padded
    # with a large negative value (sigmoid -> 0) and targets with 0: padded
    # columns contribute nothing to intersection or denominator.
    s_pad = _round_up(s, ts)
    if s_pad != s:
        x2 = jnp.pad(x2, ((0, 0), (0, s_pad - s)), constant_values=_NEG_BIG)
        t2 = jnp.pad(t2, ((0, 0), (0, s_pad - s)), constant_values=0)

    grid = (bc // bc_tile, s_pad // ts)

    # Double-buffered input working set + resident lane-wide accumulators,
    # plus headroom; clamped so it always fits v7x's 64 MiB physical VMEM.
    vmem_bytes = (2 * bc_tile * ts * (x2.dtype.itemsize + t2.dtype.itemsize)
                  + 2 * 2 * bc_tile * _LANES * 4)
    vmem_limit = int(min(max(vmem_bytes + (4 << 20), 16 << 20), 48 << 20))

    kernel = functools.partial(_dice_reduce_kernel, n_chunks=n_chunks)

    inter_w, denom_w = pl.pallas_call(
        kernel,
        out_shape=(
            jax.ShapeDtypeStruct((bc, _LANES), jnp.float32),
            jax.ShapeDtypeStruct((bc, _LANES), jnp.float32),
        ),
        grid_spec=pltpu.PrefetchScalarGridSpec(
            num_scalar_prefetch=0,
            grid=grid,
            in_specs=[
                pl.BlockSpec((bc_tile, ts), lambda i, k: (i, k)),
                pl.BlockSpec((bc_tile, ts), lambda i, k: (i, k)),
            ],
            out_specs=[
                pl.BlockSpec((bc_tile, _LANES), lambda i, k: (i, 0)),
                pl.BlockSpec((bc_tile, _LANES), lambda i, k: (i, 0)),
            ],
        ),
        compiler_params=pltpu.CompilerParams(
            dimension_semantics=("parallel", "arbitrary"),
            vmem_limit_bytes=vmem_limit,
        ),
    )(x2, t2)

    # Tiny epilogue, stays inside this jit (single cross-lane reduce + the
    # O(B*C)-sized dice/weighting math, exactly as in the PyTorch reference).
    inter = jnp.sum(inter_w, axis=1).reshape(b, c)
    denom = jnp.sum(denom_w, axis=1).reshape(b, c)
    if class_weight is None:
        class_weight = jnp.ones((c,), dtype=jnp.float32)
    else:
        class_weight = jnp.asarray(class_weight, dtype=jnp.float32)

    dice_per_bc = (2.0 * inter + smooth) / (denom + smooth)  # (B, C)
    dice_score = jnp.mean(dice_per_bc, axis=0)               # (C,)
    return 1.0 - jnp.mean(dice_score * class_weight)


def _reference_dice_loss(inputs, targets, class_weight=None, smooth=1.0):
    """Pure-JAX reference mirroring the PyTorch module (for sanity check)."""
    b, c = inputs.shape[0], inputs.shape[1]
    if class_weight is None:
        class_weight = jnp.ones((c,), dtype=jnp.float32)
    p = jax.nn.sigmoid(inputs.astype(jnp.float32)).reshape(b, c, -1)
    t = targets.astype(jnp.float32).reshape(b, c, -1)
    inter = jnp.sum(p * t, axis=2)
    denom = jnp.sum(p + t, axis=2)
    dice = (2.0 * inter + smooth) / (denom + smooth)
    dice_score = jnp.mean(dice, axis=0)
    return 1.0 - jnp.mean(dice_score * jnp.asarray(class_weight, jnp.float32))


if __name__ == "__main__":
    key = jax.random.PRNGKey(0)

    # --- Check 1: module-consistent small shape (B, C, H, W) + class weights ---
    k1, k2 = jax.random.split(key)
    B, C, H, W = 2, 4, 16, 16
    x = jax.random.normal(k1, (B, C, H, W), dtype=jnp.float32)           # logits
    t = (jax.random.uniform(k2, (B, C, H, W)) > 0.5).astype(jnp.float32)
    cw = jnp.array([1.0, 0.5, 2.0, 1.5], dtype=jnp.float32)

    loss = jax.block_until_ready(dice_loss(x, t, cw, smooth=1.0))
    ref = _reference_dice_loss(x, t, cw, smooth=1.0)
    assert jnp.allclose(loss, ref, atol=2e-5, rtol=1e-4), (loss, ref)

    # --- Check 2: non-128-divisible spatial size + multiple BC blocks (padding) ---
    k3, k4 = jax.random.split(k1)
    x2 = jax.random.normal(k3, (2, 8, 40, 40), dtype=jnp.float32)
    t2 = (jax.random.uniform(k4, (2, 8, 40, 40)) > 0.5).astype(jnp.float32)
    loss2 = jax.block_until_ready(dice_loss(x2, t2, smooth=1.0))
    ref2 = _reference_dice_loss(x2, t2, smooth=1.0)
    assert jnp.allclose(loss2, ref2, atol=2e-5, rtol=1e-4), (loss2, ref2)

    # --- Check 3: multi-step spatial reduction (k > 1), divisor-tiled (no pad) ---
    k5, k6 = jax.random.split(k3)
    x3 = jax.random.normal(k5, (2, 4, 48, 48), dtype=jnp.float32)
    t3 = (jax.random.uniform(k6, (2, 4, 48, 48)) > 0.5).astype(jnp.float32)
    loss3 = jax.block_until_ready(dice_loss(x3, t3, smooth=1.0, max_chunks=8))
    ref3 = _reference_dice_loss(x3, t3, smooth=1.0)
    assert jnp.allclose(loss3, ref3, atol=2e-5, rtol=1e-4), (loss3, ref3)

    # --- Check 4: multi-step reduction WITH tail padding (forced small tiles) ---
    loss4 = jax.block_until_ready(dice_loss(x2, t2, smooth=1.0, max_chunks=4))
    assert jnp.allclose(loss4, ref2, atol=2e-5, rtol=1e-4), (loss4, ref2)

    # --- Check 5: bf16 logits stay bf16 (no wrapper upcast), f32 accumulation ---
    k7, k8 = jax.random.split(k5)
    x5 = jax.random.normal(k7, (2, 4, 16, 16), dtype=jnp.bfloat16)
    t5 = (jax.random.uniform(k8, (2, 4, 16, 16)) > 0.5).astype(jnp.float32)
    loss5 = jax.block_until_ready(dice_loss(x5, t5, smooth=1.0))
    ref5 = _reference_dice_loss(x5, t5, smooth=1.0)
    assert jnp.allclose(loss5, ref5, atol=2e-5, rtol=1e-4), (loss5, ref5)

    print("KERNEL_OK")
</pallas_src>

<mosaic_0001>
module attributes {stable_mosaic.version = 11 : i64} {
  func.func @_dice_reduce_kernel(%arg0: i32, %arg1: i32, %arg2: memref<8x256xf32, #tpu.memory_space<vmem>>, %arg3: memref<8x256xf32, #tpu.memory_space<vmem>>, %arg4: memref<8x128xf32, #tpu.memory_space<vmem>>, %arg5: memref<8x128xf32, #tpu.memory_space<vmem>>) attributes {dimension_semantics = [#tpu.dimension_semantics<parallel>, #tpu.dimension_semantics<arbitrary>], iteration_bounds = array<i64: 1, 1>, scalar_prefetch = 0 : i64, scratch_operands = 0 : i64, tpu.core_type = #tpu.core_type<tc>, window_params = [{transform_indices = @transform_0, window_bounds = array<i64: 8, 256>}, {transform_indices = @transform_1, window_bounds = array<i64: 8, 256>}, {transform_indices = @transform_2, window_bounds = array<i64: 8, 128>}, {transform_indices = @transform_3, window_bounds = array<i64: 8, 128>}]} {
    %c0_i32 = arith.constant 0 : i32
    %0 = arith.cmpi eq, %arg1, %c0_i32 : i32
    %1 = arith.extui %0 : i1 to i32
    %c0_i32_0 = arith.constant 0 : i32
    %2 = arith.cmpi ne, %1, %c0_i32_0 : i32
    scf.if %2 {
      %cst_16 = arith.constant 0.000000e+00 : f32
      %29 = vector.broadcast %cst_16 : f32 to vector<8x128xf32>
      %c0_17 = arith.constant 0 : index
      %c0_18 = arith.constant 0 : index
      %30 = vector.load %arg4[%c0_17, %c0_18] : memref<8x128xf32, #tpu.memory_space<vmem>>, vector<8x128xf32>
      tpu.vector_store %arg4[%c0_17, %c0_18], %29 {strides = array<i32>} : memref<8x128xf32, #tpu.memory_space<vmem>>, vector<8x128xf32>,
      %cst_19 = arith.constant 0.000000e+00 : f32
      %31 = vector.broadcast %cst_19 : f32 to vector<8x128xf32>
      %c0_20 = arith.constant 0 : index
      %c0_21 = arith.constant 0 : index
      %32 = vector.load %arg5[%c0_20, %c0_21] : memref<8x128xf32, #tpu.memory_space<vmem>>, vector<8x128xf32>
      tpu.vector_store %arg5[%c0_20, %c0_21], %31 {strides = array<i32>} : memref<8x128xf32, #tpu.memory_space<vmem>>, vector<8x128xf32>,
    } else {
    }
    %c0 = arith.constant 0 : index
    %c0_1 = arith.constant 0 : index
    %3 = vector.load %arg4[%c0, %c0_1] : memref<8x128xf32, #tpu.memory_space<vmem>>, vector<8x128xf32>
    %c0_2 = arith.constant 0 : index
    %c0_3 = arith.constant 0 : index
    %4 = vector.load %arg5[%c0_2, %c0_3] : memref<8x128xf32, #tpu.memory_space<vmem>>, vector<8x128xf32>
    %c0_4 = arith.constant 0 : index
    %c0_5 = arith.constant 0 : index
    %5 = vector.load %arg2[%c0_4, %c0_5] : memref<8x256xf32, #tpu.memory_space<vmem>>, vector<8x128xf32>
    %c0_6 = arith.constant 0 : index
    %c0_7 = arith.constant 0 : index
    %6 = vector.load %arg3[%c0_6, %c0_7] : memref<8x256xf32, #tpu.memory_space<vmem>>, vector<8x128xf32>
    %7 = arith.negf %5 : vector<8x128xf32>
    %8 = math.exp %7 : vector<8x128xf32>
    %cst = arith.constant 1.000000e+00 : f32
    %9 = vector.broadcast %cst : f32 to vector<8x128xf32>
    %10 = arith.addf %9, %8 : vector<8x128xf32>
    %11 = arith.divf %9, %10 : vector<8x128xf32>
    %12 = arith.mulf %11, %6 : vector<8x128xf32>
    %13 = arith.addf %3, %12 : vector<8x128xf32>
    %14 = arith.addf %11, %6 : vector<8x128xf32>
    %15 = arith.addf %4, %14 : vector<8x128xf32>
    %c0_8 = arith.constant 0 : index
    %c128 = arith.constant 128 : index
    %16 = vector.load %arg2[%c0_8, %c128] : memref<8x256xf32, #tpu.memory_space<vmem>>, vector<8x128xf32>
    %c0_9 = arith.constant 0 : index
    %c128_10 = arith.constant 128 : index
    %17 = vector.load %arg3[%c0_9, %c128_10] : memref<8x256xf32, #tpu.memory_space<vmem>>, vector<8x128xf32>
    %18 = arith.negf %16 : vector<8x128xf32>
    %19 = math.exp %18 : vector<8x128xf32>
    %cst_11 = arith.constant 1.000000e+00 : f32
    %20 = vector.broadcast %cst_11 : f32 to vector<8x128xf32>
    %21 = arith.addf %20, %19 : vector<8x128xf32>
    %22 = arith.divf %20, %21 : vector<8x128xf32>
    %23 = arith.mulf %22, %17 : vector<8x128xf32>
    %24 = arith.addf %13, %23 : vector<8x128xf32>
    %25 = arith.addf %22, %17 : vector<8x128xf32>
    %26 = arith.addf %15, %25 : vector<8x128xf32>
    %c0_12 = arith.constant 0 : index
    %c0_13 = arith.constant 0 : index
    %27 = vector.load %arg4[%c0_12, %c0_13] : memref<8x128xf32, #tpu.memory_space<vmem>>, vector<8x128xf32>
    tpu.vector_store %arg4[%c0_12, %c0_13], %24 {strides = array<i32>} : memref<8x128xf32, #tpu.memory_space<vmem>>, vector<8x128xf32>,
    %c0_14 = arith.constant 0 : index
    %c0_15 = arith.constant 0 : index
    %28 = vector.load %arg5[%c0_14, %c0_15] : memref<8x128xf32, #tpu.memory_space<vmem>>, vector<8x128xf32>
    tpu.vector_store %arg5[%c0_14, %c0_15], %26 {strides = array<i32>} : memref<8x128xf32, #tpu.memory_space<vmem>>, vector<8x128xf32>,
    return
  }
  func.func @transform_0(%arg0: i32, %arg1: i32) -> (i32, i32) {
    %c0_i32 = arith.constant 0 : i32
    return %arg0, %arg1 : i32, i32
  }
  func.func @transform_1(%arg0: i32, %arg1: i32) -> (i32, i32) {
    %c0_i32 = arith.constant 0 : i32
    return %arg0, %arg1 : i32, i32
  }
  func.func @transform_2(%arg0: i32, %arg1: i32) -> (i32, i32) {
    %c0_i32 = arith.constant 0 : i32
    %c0_i32_0 = arith.constant 0 : i32
    return %arg0, %c0_i32 : i32, i32
  }
  func.func @transform_3(%arg0: i32, %arg1: i32) -> (i32, i32) {
    %c0_i32 = arith.constant 0 : i32
    %c0_i32_0 = arith.constant 0 : i32
    return %arg0, %c0_i32 : i32, i32
  }
}

</mosaic_0001>

<bundles_post_ra>
// kernel: dice_loss.1
= control target key start
LH: loop header
LB: loop body
LE: loop exit
PB: predicated region body
PF: predicated region fallthrough
CT: control target
= control target key end

     0   :  { %s130_s0 = inlined_call_operand.vmem [shape: f32[8,256], index: 0, kind: input, shape index: {}]   ;;  %s131_s1 = inlined_call_operand.vmem [shape: f32[8,256], index: 1, kind: input, shape index: {}]   ;;  %s132_s2 = inlined_call_operand.vmem [shape: f32[8,128], index: 2, kind: output, shape index: {0}]   ;;  %s133_s3 = inlined_call_operand.vmem [shape: f32[8,128], index: 3, kind: output, shape index: {1}]  }
   0x1   :  { %v21_v0 = vld [vmem:[%s130_s0] sm:$0xff]  ;;  %v46_v1 = vld [vmem:[%s130_s0 + $0x8] sm:$0xff] }
   0x2   :  { %v81_v2 = vmul.f32 -1.442695, %v21_v0  ;;  %v82_v3 = vmul.f32 -1.442695, %v46_v1  ;;  %v22_v23 = vld [vmem:[%s131_s1] sm:$0xff]  ;;  %v47_v26 = vld [vmem:[%s131_s1 + $0x8] sm:$0xff] }
   0x4   :  { %84 = vpow2.f32 %v81_v2 }
   0x5   :  { %86 = vpow2.f32 %v82_v3 }
   0xa   :  { %v85_v4 = vpop.eup %84 }
   0xb   :  { %v87_v5 = vpop.eup %86  ;;  %v26_v6 = vadd.f32 1.0, %v85_v4 }
   0xc   :  { %v51_v7 = vadd.f32 1.0, %v87_v5 }
   0xd   :  { %88 = vrcp.f32 %v26_v6  ;;  %vm32_vm0 = vweird.f32 %v26_v6  ;;  %v38_v11 = vand.u32 2147483648, %v26_v6  ;;  %v36_v14 = vand.u32 2147483647, %v26_v6 }
   0xe   :  { %90 = vrcp.f32 %v51_v7  ;;  %v63_v15 = vand.u32 2147483648, %v51_v7  ;;  %vm57_vm2 = vweird.f32 %v51_v7  ;;  %v61_v17 = vand.u32 2147483647, %v51_v7 }
   0xf   :  { %v39_v19 = vor.u32 1.1754944e-38, %v38_v11  ;;  %vm37_vm5 = vcmp.eq.f32.partialorder %v36_v14, 8.507059e+37 }
  0x10   :  { %v64_v22 = vor.u32 1.1754944e-38, %v63_v15  ;;  %vm62_vm7 = vcmp.eq.f32.partialorder %v61_v17, 8.507059e+37 }
  0x13   :  { %v89_v8 = vpop.eup %88 }
  0x14   :  { %v91_v9 = vpop.eup %90  ;;  %v28_v10 = vmul.f32 %v89_v8, %v26_v6  ;;  %vm33_vm1 = vweird.f32 %v89_v8 }
  0x15   :  { %v53_v12 = vmul.f32 %v91_v9, %v51_v7  ;;  %vm58_vm3 = vweird.f32 %v91_v9  ;;  %vm34_vm4 = vmor %vm32_vm0, %vm33_vm1 }
  0x16   :  { %v29_v13 = vsub.f32 1.0, %v28_v10  ;;  %vm59_vm6 = vmor %vm57_vm2, %vm58_vm3 }
  0x17   :  { %v54_v16 = vsub.f32 1.0, %v53_v12 }
  0x18   :  { %v30_v18 = vmul.f32 %v89_v8, %v29_v13 }
  0x19   :  { %v55_v20 = vmul.f32 %v91_v9, %v54_v16 }
  0x1a   :  { %v31_v21 = vadd.f32 %v89_v8, %v30_v18 }
  0x1b   :  { %v56_v24 = vadd.f32 %v91_v9, %v55_v20 }
  0x1c   :  { %v35_v25 = vsel %vm34_vm4, %v89_v8, %v31_v21 }
  0x1d   :  { %v40_v27 = vsel %vm37_vm5, %v39_v19, %v35_v25  ;;  %v60_v28 = vsel %vm59_vm6, %v91_v9, %v56_v24 }
  0x1e   :  { %v42_v29 = vmul.f32 %v40_v27, %v22_v23  ;;  %v65_v30 = vsel %vm62_vm7, %v64_v22, %v60_v28  ;;  %v44_v31 = vadd.f32 %v40_v27, %v22_v23 }
  0x1f   :  { %v67_v32 = vmul.f32 %v65_v30, %v47_v26  ;;  %v69_v33 = vadd.f32 %v65_v30, %v47_v26 }
  0x21   :  { %v68_v34 = vadd.f32 %v67_v32, %v42_v29  ;;  %v70_v35 = vadd.f32 %v69_v33, %v44_v31 }
  0x23   :  { %71 = vst [vmem:[%s132_s2] sm:$0xff] %v68_v34 }
  0x24   :  { %72 = vst [vmem:[%s133_s3] sm:$0xff] %v70_v35 }

</bundles_post_ra>
